<compile_context>
chip_gen: v6e
topology: v6e:2x2x1
jax: 0.10.0
libtpu: 0.0.40
codegen_flags: <defaults>
</compile_context>

<pallas_src>
import jax
import jax.numpy as jnp
from jax.experimental import pallas as pl
from jax.experimental.pallas import tpu as pltpu


# ----------------------------------------------------------------------------
# Kernel: one (batch, pixel-tile) grid point, tiles in (C, T) layout:
#   s    = Wg @ G + Wx @ X + (bg + bx)     (fused 1x1 convs + folded BN, f32 acc)
#   s    = relu(s)                          (F_int, T) f32
#   psi  = sigmoid(sum_i wp_i * s_i + bp)   (1, T) lane-dense
#   out  = X * psi                          (F_l, T), broadcast over sublanes
# ----------------------------------------------------------------------------
def _attention_kernel(g_ref, x_ref, wg_ref, wx_ref, b_ref, wp_ref, bp_ref, o_ref):
    # Native-dtype loads: no full-tile f32 temporaries; MXU accumulates in f32.
    x = x_ref[...]                                                    # (F_l, T)
    s = jnp.dot(wg_ref[...], g_ref[...], preferred_element_type=jnp.float32)
    s = s + jnp.dot(wx_ref[...], x, preferred_element_type=jnp.float32)
    s = jnp.maximum(s + b_ref[...], 0.0)                              # (F_int, T) f32

    # 1-channel psi projection: VPU multiply + cross-sublane reduce -> (1, T).
    logits = jnp.sum(wp_ref[...] * s, axis=0, keepdims=True) + bp_ref[...]
    psi = jax.nn.sigmoid(logits).astype(o_ref.dtype)                  # (1, T)

    o_ref[...] = x * psi                      # broadcast over channel sublanes


# ----------------------------------------------------------------------------
# VMEM-aware tile sizing.
# ----------------------------------------------------------------------------
def _sublane_pad(c, itemsize):
    """Round a channel count up to the sublane packing (8 f32 / 16 bf16 / 32 i8)."""
    mult = 8 * max(1, 4 // itemsize)
    return ((c + mult - 1) // mult) * mult


def _padded_bytes(shape2d, itemsize):
    r, c = shape2d
    return _sublane_pad(r, itemsize) * (pl.cdiv(c, 128) * 128) * itemsize


def _vmem_caps():
    """(scoped-VMEM-limit cap, tile budget) per TPU generation."""
    cap = 128 << 20
    try:
        cap = int(getattr(pltpu.get_tpu_info(), "vmem_capacity_bytes", cap))
    except Exception:
        pass
    if cap <= (64 << 20):              # v7x-class: 64 MiB physical VMEM per TC
        return 40 << 20, 20 << 20
    return 64 << 20, 40 << 20          # v5e / v6e: 128 MiB physical VMEM


def _pick_tile(hw, n, f_g, f_l, f_int, itemsize, vmem_budget):
    # Honest per-pixel-column footprint: double-buffered (g, x, out) tiles in the
    # activation dtype with sublane padding, plus the f32 (F_int, T) intermediate
    # and one f32 dot temporary.
    act_cols = _sublane_pad(f_g, itemsize) + 2 * _sublane_pad(f_l, itemsize)
    per_pixel = 2 * act_cols * itemsize + 2 * _sublane_pad(f_int, 4) * 4
    max_tile = max(128, (vmem_budget // per_pixel) // 128 * 128)
    if hw <= max_tile:
        # Whole row fits. If the batch axis alone can't feed two TensorCores
        # (v7x), split the pixel axis into two lane-aligned tiles.
        if n == 1 and hw >= 256:
            return pl.cdiv(pl.cdiv(hw, 2), 128) * 128
        return hw                       # equal-to-dim block is always legal
    return max_tile                     # tail block is masked by Pallas (cdiv grid)


def attention_block_pallas(g3, x3, wg, wx, b_gx, wp, bp, *, vmem_tile_budget=None):
    """g3: (N, F_g, HW), x3: (N, F_l, HW) channels-major slabs. Returns (N, F_l, HW)."""
    N, F_g, HW = g3.shape
    _, F_l, _ = x3.shape
    F_int = wg.shape[0]

    itemsize = jnp.dtype(x3.dtype).itemsize
    w_itemsize = jnp.dtype(wg.dtype).itemsize

    limit_cap, default_budget = _vmem_caps()
    budget = vmem_tile_budget if vmem_tile_budget is not None else default_budget
    T = _pick_tile(HW, N, F_g, F_l, F_int, itemsize, budget)
    grid = (N, pl.cdiv(HW, T))          # both axes fully parallel (megacore)

    # Explicit scoped-VMEM limit from honest accounting, capped per generation.
    tile_bytes = 2 * (_sublane_pad(F_g, itemsize) + 2 * _sublane_pad(F_l, itemsize)) * T * itemsize
    inter_bytes = 2 * _sublane_pad(F_int, 4) * T * 4
    weight_bytes = 2 * (_padded_bytes(wg.shape, w_itemsize)
                        + _padded_bytes(wx.shape, w_itemsize)
                        + _padded_bytes(b_gx.shape, 4)
                        + _padded_bytes(wp.shape, 4)
                        + _padded_bytes(bp.shape, 4))
    vmem_limit = int(min(limit_cap,
                         max(16 << 20, tile_bytes + inter_bytes + weight_bytes + (4 << 20))))

    full = lambda n, t: (0, 0)          # whole (tiny) parameter arrays
    # NOTE: the five parameter blocks are grid-invariant; their double-buffered
    # copies cost only a few KiB, so default buffering is kept deliberately.

    return pl.pallas_call(
        _attention_kernel,
        out_shape=jax.ShapeDtypeStruct((N, F_l, HW), x3.dtype),
        grid_spec=pltpu.PrefetchScalarGridSpec(
            num_scalar_prefetch=0,
            grid=grid,
            in_specs=[
                pl.BlockSpec((None, F_g, T), lambda n, t: (n, 0, t)),   # g tile (F_g, T)
                pl.BlockSpec((None, F_l, T), lambda n, t: (n, 0, t)),   # x tile (F_l, T)
                pl.BlockSpec((F_int, F_g), full),                       # Wg  (act dtype)
                pl.BlockSpec((F_int, F_l), full),                       # Wx  (act dtype)
                pl.BlockSpec((F_int, 1), full),                         # bg + bx (f32)
                pl.BlockSpec((F_int, 1), full),                         # Wpsi column (f32)
                pl.BlockSpec((1, 1), full),                             # bpsi (f32)
            ],
            out_specs=pl.BlockSpec((None, F_l, T), lambda n, t: (n, 0, t)),
        ),
        compiler_params=pltpu.CompilerParams(
            dimension_semantics=("parallel", "parallel"),
            vmem_limit_bytes=vmem_limit),
    )(g3, x3, wg, wx, b_gx, wp, bp)


# ----------------------------------------------------------------------------
# Parameter construction: deterministic init + fold BatchNorm (eval mode)
# into the preceding 1x1 conv.  Weights kept in W @ X orientation.
# ----------------------------------------------------------------------------
def _fold_conv_bn(key, c_in, c_out, eps=1e-5):
    k_w, k_b, k_g, k_be, k_m, k_v = jax.random.split(key, 6)
    w = jax.random.normal(k_w, (c_out, c_in), jnp.float32) * 0.1
    b = jax.random.normal(k_b, (c_out,), jnp.float32) * 0.1
    gamma = 1.0 + 0.1 * jax.random.normal(k_g, (c_out,), jnp.float32)
    beta = 0.1 * jax.random.normal(k_be, (c_out,), jnp.float32)
    rmean = 0.1 * jax.random.normal(k_m, (c_out,), jnp.float32)
    rvar = jnp.abs(1.0 + 0.1 * jax.random.normal(k_v, (c_out,), jnp.float32))
    scale = gamma / jnp.sqrt(rvar + eps)
    w_f = w * scale[:, None]                    # (c_out, c_in): W @ X orientation
    b_f = (b - rmean) * scale + beta            # (c_out,)
    return w_f, b_f[:, None]                    # (c_out, c_in), (c_out, 1)


def make_params(key, F_g, F_l, F_int, dtype=jnp.float32):
    kg, kx, kp = jax.random.split(key, 3)
    wg, bg = _fold_conv_bn(kg, F_g, F_int)      # (F_int, F_g), (F_int, 1)
    wx, bx = _fold_conv_bn(kx, F_l, F_int)      # (F_int, F_l), (F_int, 1)
    wp_row, bp = _fold_conv_bn(kp, F_int, 1)    # (1, F_int), (1, 1)
    # Projection weights in the activation dtype (native bf16 MXU path); biases
    # and the psi column stay f32 (they combine with the f32 accumulator).
    return (wg.astype(dtype), wx.astype(dtype), bg + bx, wp_row.T, bp)


# ----------------------------------------------------------------------------
# NCHW glue (free reshapes only — no transposes) + pure-JAX reference.
# ----------------------------------------------------------------------------
def attention_block_forward(g_nchw, x_nchw, params):
    N, F_g, H, W = g_nchw.shape
    _, F_l, _, _ = x_nchw.shape
    g3 = g_nchw.reshape(N, F_g, H * W)          # NCHW is already channels-major: free
    x3 = x_nchw.reshape(N, F_l, H * W)
    out3 = attention_block_pallas(g3, x3, *params)
    return out3.reshape(N, F_l, H, W)


def attention_block_ref(g_nchw, x_nchw, params):
    wg, wx, b_gx, wp, bp = [jnp.asarray(p, jnp.float32) for p in params]
    N, F_g, H, W = g_nchw.shape
    F_l = x_nchw.shape[1]
    g3 = g_nchw.astype(jnp.float32).reshape(N, F_g, H * W)
    x3 = x_nchw.astype(jnp.float32).reshape(N, F_l, H * W)
    s = (jnp.einsum('ic,nct->nit', wg, g3)
         + jnp.einsum('ic,nct->nit', wx, x3) + b_gx[None])
    s = jnp.maximum(s, 0.0)
    psi = jax.nn.sigmoid(jnp.einsum('io,nit->not', wp, s) + bp[None])
    out = x3 * psi
    return out.reshape(N, F_l, H, W)


if __name__ == "__main__":
    key = jax.random.PRNGKey(0)
    k_g, k_x, k_p = jax.random.split(key, 3)

    # Small shapes consistent with the module: attention_block(F_g=4, F_l=4, F_int=8)
    N, F_g, F_l, F_int, H, W = 2, 4, 4, 8, 16, 16

    g = jax.random.normal(k_g, (N, F_g, H, W), jnp.float32)
    x = jax.random.normal(k_x, (N, F_l, H, W), jnp.float32)

    # float32 activations / weights.
    params = make_params(k_p, F_g, F_l, F_int, dtype=jnp.float32)
    out = jax.block_until_ready(attention_block_forward(g, x, params))
    ref = attention_block_ref(g, x, params)
    assert out.shape == (N, F_l, H, W)
    assert jnp.allclose(out, ref, atol=1e-4, rtol=1e-4)

    # bfloat16 activations / weights (native MXU dtype, f32 accumulation).
    params_bf = make_params(k_p, F_g, F_l, F_int, dtype=jnp.bfloat16)
    g_bf, x_bf = g.astype(jnp.bfloat16), x.astype(jnp.bfloat16)
    out_bf = jax.block_until_ready(attention_block_forward(g_bf, x_bf, params_bf))
    ref_bf = attention_block_ref(g_bf, x_bf, params_bf)
    assert out_bf.dtype == jnp.bfloat16
    assert jnp.allclose(out_bf.astype(jnp.float32), ref_bf, atol=8e-2, rtol=8e-2)

    print("KERNEL_OK")
</pallas_src>

<mosaic_0001>
module attributes {stable_mosaic.version = 11 : i64} {
  func.func @_attention_kernel(%arg0: i32, %arg1: i32, %arg2: memref<1x4x256xf32, #tpu.memory_space<vmem>>, %arg3: memref<1x4x256xf32, #tpu.memory_space<vmem>>, %arg4: memref<8x4xf32, #tpu.memory_space<vmem>>, %arg5: memref<8x4xf32, #tpu.memory_space<vmem>>, %arg6: memref<8x1xf32, #tpu.memory_space<vmem>>, %arg7: memref<8x1xf32, #tpu.memory_space<vmem>>, %arg8: memref<1x1xf32, #tpu.memory_space<vmem>>, %arg9: memref<1x4x256xf32, #tpu.memory_space<vmem>>) attributes {dimension_semantics = [#tpu.dimension_semantics<parallel>, #tpu.dimension_semantics<parallel>], iteration_bounds = array<i64: 2, 1>, scalar_prefetch = 0 : i64, scratch_operands = 0 : i64, tpu.core_type = #tpu.core_type<tc>, window_params = [{transform_indices = @transform_0, window_bounds = array<i64: 1, 4, 256>}, {transform_indices = @transform_1, window_bounds = array<i64: 1, 4, 256>}, {pipeline_mode = #tpu.pipeline_mode<synchronous>, transform_indices = @transform_2, window_bounds = array<i64: 8, 4>}, {pipeline_mode = #tpu.pipeline_mode<synchronous>, transform_indices = @transform_3, window_bounds = array<i64: 8, 4>}, {pipeline_mode = #tpu.pipeline_mode<synchronous>, transform_indices = @transform_4, window_bounds = array<i64: 8, 1>}, {pipeline_mode = #tpu.pipeline_mode<synchronous>, transform_indices = @transform_5, window_bounds = array<i64: 8, 1>}, {pipeline_mode = #tpu.pipeline_mode<synchronous>, transform_indices = @transform_6, window_bounds = array<i64: 1, 1>}, {transform_indices = @transform_7, window_bounds = array<i64: 1, 4, 256>}]} {
    %c0 = arith.constant 0 : index
    %c0_0 = arith.constant 0 : index
    %c0_1 = arith.constant 0 : index
    %0 = vector.load %arg3[%c0, %c0_0, %c0_1] : memref<1x4x256xf32, #tpu.memory_space<vmem>>, vector<1x4x256xf32>
    %1 = vector.shape_cast %0 : vector<1x4x256xf32> to vector<4x256xf32>
    %c0_2 = arith.constant 0 : index
    %c0_3 = arith.constant 0 : index
    %2 = vector.load %arg4[%c0_2, %c0_3] : memref<8x4xf32, #tpu.memory_space<vmem>>, vector<8x4xf32>
    %c0_4 = arith.constant 0 : index
    %c0_5 = arith.constant 0 : index
    %c0_6 = arith.constant 0 : index
    %3 = vector.load %arg2[%c0_4, %c0_5, %c0_6] : memref<1x4x256xf32, #tpu.memory_space<vmem>>, vector<1x4x256xf32>
    %4 = vector.shape_cast %3 : vector<1x4x256xf32> to vector<4x256xf32>
    %cst = arith.constant dense<0.000000e+00> : vector<8x256xf32>
    %5 = tpu.matmul %2, %4, %cst {dimension_numbers = #tpu.dot_dimension_numbers<[1], [0], [0], [1], [0, 0, 1, 1], [], []>} : vector<8x4xf32>, vector<4x256xf32>, vector<8x256xf32> -> vector<8x256xf32>
    %c0_7 = arith.constant 0 : index
    %c0_8 = arith.constant 0 : index
    %6 = vector.load %arg5[%c0_7, %c0_8] : memref<8x4xf32, #tpu.memory_space<vmem>>, vector<8x4xf32>
    %cst_9 = arith.constant dense<0.000000e+00> : vector<8x256xf32>
    %7 = tpu.matmul %6, %1, %cst_9 {dimension_numbers = #tpu.dot_dimension_numbers<[1], [0], [0], [1], [0, 0, 1, 1], [], []>} : vector<8x4xf32>, vector<4x256xf32>, vector<8x256xf32> -> vector<8x256xf32>
    %8 = arith.addf %5, %7 : vector<8x256xf32>
    %c0_10 = arith.constant 0 : index
    %c0_11 = arith.constant 0 : index
    %9 = vector.load %arg6[%c0_10, %c0_11] : memref<8x1xf32, #tpu.memory_space<vmem>>, vector<8x1xf32>
    %10 = vector.broadcast %9 : vector<8x1xf32> to vector<8x256xf32>
    %11 = arith.addf %8, %10 : vector<8x256xf32>
    %cst_12 = arith.constant 0.000000e+00 : f32
    %12 = vector.broadcast %cst_12 : f32 to vector<8x256xf32>
    %13 = arith.maximumf %11, %12 : vector<8x256xf32>
    %c0_13 = arith.constant 0 : index
    %c0_14 = arith.constant 0 : index
    %14 = vector.load %arg7[%c0_13, %c0_14] : memref<8x1xf32, #tpu.memory_space<vmem>>, vector<8x1xf32>
    %15 = vector.broadcast %14 : vector<8x1xf32> to vector<8x256xf32>
    %16 = arith.mulf %15, %13 : vector<8x256xf32>
    %cst_15 = arith.constant dense<0.000000e+00> : vector<256xf32>
    %17 = vector.multi_reduction <add>, %16, %cst_15 [0] : vector<8x256xf32> to vector<256xf32>
    %18 = vector.shape_cast %17 : vector<256xf32> to vector<1x256xf32>
    %c0_16 = arith.constant 0 : index
    %c0_17 = arith.constant 0 : index
    %19 = vector.load %arg8[%c0_16, %c0_17] : memref<1x1xf32, #tpu.memory_space<vmem>>, vector<1x1xf32>
    %20 = vector.broadcast %19 : vector<1x1xf32> to vector<1x256xf32>
    %21 = arith.addf %18, %20 : vector<1x256xf32>
    %22 = arith.negf %21 : vector<1x256xf32>
    %23 = math.exp %22 : vector<1x256xf32>
    %cst_18 = arith.constant 1.000000e+00 : f32
    %24 = vector.broadcast %cst_18 : f32 to vector<1x256xf32>
    %25 = arith.addf %24, %23 : vector<1x256xf32>
    %26 = arith.divf %24, %25 : vector<1x256xf32>
    %27 = vector.broadcast %26 : vector<1x256xf32> to vector<4x256xf32>
    %28 = arith.mulf %1, %27 : vector<4x256xf32>
    %c0_19 = arith.constant 0 : index
    %c0_20 = arith.constant 0 : index
    %c0_21 = arith.constant 0 : index
    %29 = vector.load %arg9[%c0_19, %c0_20, %c0_21] : memref<1x4x256xf32, #tpu.memory_space<vmem>>, vector<1x4x256xf32>
    %30 = vector.shape_cast %29 : vector<1x4x256xf32> to vector<4x256xf32>
    %31 = vector.shape_cast %28 : vector<4x256xf32> to vector<1x4x256xf32>
    tpu.vector_store %arg9[%c0_19, %c0_20, %c0_21], %31 {strides = array<i32>} : memref<1x4x256xf32, #tpu.memory_space<vmem>>, vector<1x4x256xf32>,
    return
  }
  func.func @transform_0(%arg0: i32, %arg1: i32) -> (i32, i32, i32) {
    %c0_i32 = arith.constant 0 : i32
    %c0_i32_0 = arith.constant 0 : i32
    return %arg0, %c0_i32, %arg1 : i32, i32, i32
  }
  func.func @transform_1(%arg0: i32, %arg1: i32) -> (i32, i32, i32) {
    %c0_i32 = arith.constant 0 : i32
    %c0_i32_0 = arith.constant 0 : i32
    return %arg0, %c0_i32, %arg1 : i32, i32, i32
  }
  func.func @transform_2(%arg0: i32, %arg1: i32) -> (i32, i32) {
    %c0_i32 = arith.constant 0 : i32
    %c0_i32_0 = arith.constant 0 : i32
    %c0_i32_1 = arith.constant 0 : i32
    return %c0_i32, %c0_i32_0 : i32, i32
  }
  func.func @transform_3(%arg0: i32, %arg1: i32) -> (i32, i32) {
    %c0_i32 = arith.constant 0 : i32
    %c0_i32_0 = arith.constant 0 : i32
    %c0_i32_1 = arith.constant 0 : i32
    return %c0_i32, %c0_i32_0 : i32, i32
  }
  func.func @transform_4(%arg0: i32, %arg1: i32) -> (i32, i32) {
    %c0_i32 = arith.constant 0 : i32
    %c0_i32_0 = arith.constant 0 : i32
    %c0_i32_1 = arith.constant 0 : i32
    return %c0_i32, %c0_i32_0 : i32, i32
  }
  func.func @transform_5(%arg0: i32, %arg1: i32) -> (i32, i32) {
    %c0_i32 = arith.constant 0 : i32
    %c0_i32_0 = arith.constant 0 : i32
    %c0_i32_1 = arith.constant 0 : i32
    return %c0_i32, %c0_i32_0 : i32, i32
  }
  func.func @transform_6(%arg0: i32, %arg1: i32) -> (i32, i32) {
    %c0_i32 = arith.constant 0 : i32
    %c0_i32_0 = arith.constant 0 : i32
    %c0_i32_1 = arith.constant 0 : i32
    return %c0_i32, %c0_i32_0 : i32, i32
  }
  func.func @transform_7(%arg0: i32, %arg1: i32) -> (i32, i32, i32) {
    %c0_i32 = arith.constant 0 : i32
    %c0_i32_0 = arith.constant 0 : i32
    return %arg0, %c0_i32, %arg1 : i32, i32, i32
  }
}

</mosaic_0001>

<bundles_post_ra>
// kernel: tpu_custom_call.1
= control target key start
LH: loop header
LB: loop body
LE: loop exit
PB: predicated region body
PF: predicated region fallthrough
CT: control target
= control target key end

     0   :  { %s1022_s0 = inlined_call_operand.vmem [shape: f32[2,4,256], index: 0, kind: input, shape index: {}]   ;;  %s1023_s1 = inlined_call_operand.vmem [shape: f32[2,4,256], index: 1, kind: input, shape index: {}]   ;;  %s1024_s2 = inlined_call_operand.vmem [shape: f32[8,4], index: 2, kind: input, shape index: {}]   ;;  %s1025_s3 = inlined_call_operand.vmem [shape: f32[8,4], index: 3, kind: input, shape index: {}]   ;;  %s1026_s4 = inlined_call_operand.vmem [shape: f32[8,1], index: 4, kind: input, shape index: {}]   ;;  %s1027_s5 = inlined_call_operand.vmem [shape: f32[8,1], index: 5, kind: input, shape index: {}]   ;;  %s1028_s6 = inlined_call_operand.<no memory space> [shape: f32[1,1], index: 6, kind: input, shape index: {}]   ;;  %s1029_s7 = inlined_call_operand.hbm [shape: f32[2,4,256], index: 7, kind: output, shape index: {}]  }
   0x1   :  { %v12_v0 = vstv %s1028_s6 }
   0x2   :  { %13 = vst [vmem:[#allocation2] sm:$0x1] %v12_v0 }
   0x3   :  { %14 = vsyncpa [#allocation4], 0 }
   0x4   :  { %16 = vsyncpa [#allocation4 + $0x1], 0  ;;  %s902_s26 = smov 0   ;;  %s904_s27 = smov 0  }
   0x5   :  { %s906_s28 = smov 0   ;;  %s908_s29 = smov 0  }
   0x6   :  { %s910_s30 = smov 0   ;;  %s912_s8 = smov 0  }
   0x7 LB: > { %s683_s6 = sadd.s32 4294967295, %s854_s8   ;;  %s684_s9 = sadd.s32 4294967294, %s854_s8   ;;  %s854_s8 = sphi %s912_s8, %s22_s8   ;;  %s850_s30 = sphi %s910_s30, %s1036_s30   ;;  %s846_s29 = sphi %s908_s29, %s1035_s29   ;;  %s842_s28 = sphi %s906_s28, %s1034_s28   ;;  %s838_s27 = sphi %s904_s27, %s1033_s27   ;;  %s834_s26 = sphi %s902_s26, %s1032_s26  }
   0x8   : > { %s34_s10 = sadd.s32 1, %s850_s30  ;;  %s204_s11 = sadd.s32 1, %s842_s28 }
   0x9   : > { %p36_p0 = scmp.ge.s32.totalorder %s34_s10, 2  ;;  %p214_p1 = scmp.ne.s32.totalorder %s842_s28, %s838_s27 }
   0xa   : > { %p215_p2 = scmp.eq.s32.totalorder %s683_s6, 1  ;;  %p220_p3 = scmp.ne.s32.totalorder %s838_s27, %s834_s26 }
   0xb   : > { %s1038_s10 = smov (%p36_p0, %s34_s10), 0  ;;  %p221_p5 = scmp.eq.s32.totalorder %s684_s9, 1 }
   0xc   : > { %p942_p4 = por %p215_p2, %p214_p1  ;;  %s199_s13 = ssub.s32 %s850_s30, %s1038_s10 }
   0xd   : > { %p687_p6 = scmp.ge.s32.totalorder %s854_s8, 1  ;;  %p202_p7 = scmp.eq.s32.totalorder %s199_s13, 0 }
   0xe   : > { %p949_p8 = por %p221_p5, %p220_p3  ;;  %p280_p9 = scmp.lt.s32.totalorder %s854_s8, 3 }
   0xf   : > { %s955_s15 = scalar_select %p202_p7, %s842_s28, %s204_s11  }
  0x10   : > { %p281_p10 = pnand %p687_p6, %p280_p9 }
  0x11   : > { %p326_p11 = scmp.lt.s32.totalorder (!%p281_p10), %s846_s29, 1  ;;  %s708_s20 = sshll.u32 (!%p281_p10), %s846_s29, 7 }
  0x12   : > { %284 = sbr.rel (%p281_p10) target bundleno = 299 (0x12b), region = 48  ;;  %s587_s25 = scalar_lea.hbm (!%p281_p10), %s1029_s7, %s708_s20 }
  0x13   : > { %s858_s11 = smov (!%p281_p10), [#allocation3]  }
  0x14   : > { %s782_s13 = sshll.u32 (!%p281_p10), %s858_s11, 4  ;;  %s783_s13 = int_to_ptr.vmem [resolvable:$false] %s782_s13 }
  0x17   : > { %v856_v1 = vmov 0.0   ;;  %v512_v2 = vld [vmem:[%s1026_s4] sm:$0xff]  ;;  %s327_s18 = scalar_select %p326_p11, %s846_s29, 1  ;;  %v857_v4 = vmov 0   ;;  %vm356_vm0 = vcmask 1043456   ;;  %vm352_vm1 = vcmask 31744  }
  0x18   : > { %425 = vmatprep.mubr.f32.mxu0 %v856_v1  ;;  %505 = vmatprep.mubr.f32.mxu1 %v856_v1  ;;  %v542_v3 = vld [vmem:[#allocation2] sm:$0x1]  ;;  %v548_v22 = vlaneseq  ;;  %s784_s29 = scalar_lea.vmem %s783_s13, 256 }
  0x19   : > { %766 = vset.pattern.permute.xlu0 %v857_v4  ;;  %767 = vset.pattern.permute.xlu1 %v857_v4  ;;  %s706_s19 = sshll.u32 %s327_s18, 3  ;;  %v522_v5 = vld [vmem:[%s1027_s5] sm:$0xff]  ;;  %s322_s18 = sand.u32 1, %s838_s27  }
  0x1a   : > { %515 = vperm.xlu0 %766, %v512_v2   ;;  %545 = vperm.xlu1 %767, %v542_v3   ;;  %s343_s24 = scalar_lea.vmem %s1023_s1, %s706_s19  ;;  %s333_s9 = scalar_lea.vmem %s1022_s0, %s706_s19  ;;  %v349_v10 = vld [vmem:[%s1025_s3] sm:$0xff]  ;;  %v549_v28 = vshrl.u32 %v548_v22, 7 }
  0x1b   : > { %v971_v6 = vld [vmem:[%s343_s24] sm:$0xff]  ;;  %s688_s19 = sshll.u32 %s322_s18, 3  ;;  %s573_s6 = scalar_lea.sflag [#allocation4], %s322_s18 }
  0x1c   : > { %v348_v7 = vld [vmem:[%s333_s9] sm:$0xff]  ;;  %v351_v8 = vcombine.high %v971_v6, %v971_v6  ;;  %v550_v33 = vsub.s32 0, %v549_v28  ;;  %s324_s21 = scalar_lea.vmem [#allocation3], %s688_s19 }
  0x1d   : > { %v433_v9 = vcombine.high %v348_v7, %v348_v7  ;;  %v347_v11 = vld [vmem:[%s1024_s2] sm:$0xff]  ;;  %s589_s22 = sshll.u32 %s324_s21, 4  ;;  %s590_s22 = int_to_ptr.vmem [resolvable:$true] %s589_s22 }
  0x1e   : > { %525 = vperm.xlu0 %766, %v522_v5   ;;  %693 = vmatprep.subr.msk.mxu0 %vm356_vm0, %v351_v8  ;;  %s778_s9 = scalar_lea.vmem %s590_s22, 128  ;;  %p785_p1 = scmp.lt.s32.totalorder %s590_s22, %s783_s13 }
  0x1f   : > { %696 = vmatprep.subr.msk.mxu1 %vm356_vm0, %v433_v9  ;;  %694 = vmatpush1.msk.msra.mxu0 %vm356_vm0, %v971_v6  ;;  %p779_p12 = scmp.ne.s32.totalorder %s590_s22, %s778_s9  ;;  %p786_p2 = scmp.lt.s32.totalorder %s784_s29, %s778_s9 }
  0x20   : > { %697 = vmatpush1.msk.msra.mxu1 %vm356_vm0, %v348_v7  ;;  %695 = vmatmul.mubr.msk.f32.vlgmr.msra.gmra.mxu0 %vm352_vm1, %v349_v10 }
  0x21   : > { %698 = vmatmul.mubr.msk.f32.vlgmr.msra.gmra.mxu1 %vm352_vm1, %v347_v11  ;;  %p780_p13 = pnand %p779_p12, %p942_p4  ;;  %p787_p3 = por %p786_p2, %p785_p1 }
  0x23   : > { %p781_p0 = pneg %p780_p13 }
  0x25   : > { %p788_p5 = pnand %p787_p3, %p781_p0 }
  0x95   : > { %v516_v12 = vpop.permute.xlu0 %515  ;;  %v546_v34 = vpop.permute.xlu1 %545 }
  0x96   : > { %v551_v39 = vrot.slane %v546_v34, %v550_v33 }
  0x99   : > { %v526_v23 = vpop.permute.xlu0 %525 }
  0xe0   : > { %v427_v13 = vpop.f32.mrf.mxu0 }
  0xe1   : > { %v507_v14 = vpop.f32.mrf.mxu1 }
  0xe2   : > { %v508_v15 = vadd.f32 %v507_v14, %v427_v13  ;;  %v429_v16 = vpop.f32.mrf.mxu0 }
  0xe3   : > { %v509_v17 = vpop.f32.mrf.mxu1 }
  0xe4   : > { %v518_v18 = vadd.f32 %v516_v12, %v508_v15  ;;  %v510_v19 = vadd.f32 %v509_v17, %v429_v16 }
  0xe6   : > { %v519_v20 = vadd.f32 %v516_v12, %v510_v19  ;;  %v520_v21 = vmax.f32 %v518_v18, 0.0 }
  0xe8   : > { %v521_v24 = vmax.f32 %v519_v20, 0.0  ;;  %v528_v25 = vmul.f32 %v526_v23, %v520_v21 }
  0xea   : > { %v529_v26 = vmul.f32 %v526_v23, %v521_v24  ;;  %v530_v27 = vrot.slane %v528_v25, 4 }
  0xec   : > { %v531_v29 = vadd.f32 %v530_v27, %v528_v25  ;;  %v536_v30 = vrot.slane %v529_v26, 4 }
  0xee   : > { %v532_v31 = vrot.slane %v531_v29, 2  ;;  %v537_v32 = vadd.f32 %v536_v30, %v529_v26 }
  0xf0   : > { %v533_v35 = vadd.f32 %v532_v31, %v531_v29  ;;  %v538_v36 = vrot.slane %v537_v32, 2 }
  0xf2   : > { %v539_v37 = vadd.f32 %v538_v36, %v537_v32  ;;  %v534_v38 = vrot.slane %v533_v35, 1 }
  0xf4   : > { %v535_v40 = vadd.f32 %v534_v38, %v533_v35  ;;  %v540_v41 = vrot.slane %v539_v37, 1 }
  0xf6   : > { %v541_v42 = vadd.f32 %v540_v41, %v539_v37  ;;  %v552_v43 = vadd.f32 %v551_v39, %v535_v40 }
  0xf8   : > { %v553_v44 = vadd.f32 %v551_v39, %v541_v42  ;;  %v699_v45 = vmul.f32 -1.442695, %v552_v43 }
  0xfa   : > { %770 = vpow2.f32 %v699_v45  ;;  %v700_v46 = vmul.f32 -1.442695, %v553_v44 }
  0xfc   : > { %772 = vpow2.f32 %v700_v46 }
 0x107   : > { %v771_v47 = vpop.eup %770 }
 0x108   : > { %v560_v48 = vadd.f32 1.0, %v771_v47 }
 0x109   : > { %v773_v49 = vpop.eup %772 }
 0x10a   : > { %v561_v50 = vadd.f32 1.0, %v773_v49  ;;  %774 = vrcp.f32 %v560_v48 }
 0x10c   : > { %776 = vrcp.f32 %v561_v50 }
 0x117   : > { %v775_v51 = vpop.eup %774 }
 0x119   : > { %v777_v52 = vpop.eup %776 }
 0x11a   : > { %v568_v53 = vcombine.low %v775_v51, %v777_v52 }
 0x11c   : > { %v570_v54 = vmul.f32 %v568_v53, %v971_v6 }
 0x11e   : > { %571 = vst [vmem:[%s324_s21] sm:$0xff] %v570_v54 }
 0x11f   : > { %791 = shalt.err (!%p788_p5)
}
 0x120   : > { %s792_s16 = scalar_lea.hbm %s587_s25, 128  ;;  %s796_s19 = scalar_lea.hbm %s1029_s7, 256 }
 0x121   : > { %p793_p6 = scmp.ne.s32.totalorder %s587_s25, %s792_s16  ;;  %p797_p10 = scmp.lt.s32.totalorder %s587_s25, %s1029_s7 }
 0x122   : > { %p798_p11 = scmp.lt.s32.totalorder %s796_s19, %s792_s16 }
 0x123   : > { %p794_p7 = pnand %p793_p6, %p942_p4 }
 0x124   : > { %p799_p12 = por %p798_p11, %p797_p10 }
 0x125   : > { %p795_p9 = pneg %p794_p7 }
 0x127   : > { %p800_p13 = pnand %p799_p12, %p795_p9 }
 0x129   : > { %803 = shalt.err (!%p800_p13)
}
 0x12a   : > { %709 = dma.vmem_to_hbm [thread:$0]  (%p942_p4), %s590_s22, 128, %s587_s25, %s573_s6  }
 0x12b PF: > { %p715_p0 = scmp.ge.s32.totalorder %s854_s8, 2  ;;  %s601_s23 = sand.u32 1, %s834_s26  }
 0x12c   : > { %s602_s24 = scalar_lea.sflag [#allocation4], %s601_s23 }
 0x12d   : > { %p712_p1 = pnand %p715_p0, %p949_p8 }
 0x12f   : > { %p713_p2 = pneg %p712_p1 }
 0x131   : > { %829 = dma.done.wait (%p713_p2), %s602_s24, 128  }
 0x132   : > { %831 = vsyncadd (%p713_p2), %s602_s24, 4294967168  ;;  %s22_s8 = sadd.s32 1, %s854_s8   ;;  %s1032_s26 = smov %s838_s27 }
 0x133   : > { %p19_p3 = scmp.ge.s32.totalorder %s22_s8, 4   ;;  %s1033_s27 = smov %s842_s28 }
 0x134   : > { %s1034_s28 = smov %s955_s15  ;;  %s1035_s29 = smov %s850_s30 }
 0x135   : > { %s1036_s30 = smov %s1038_s10  ;;  %21 = sbr.rel (!%p19_p3) target bundleno = 7 (0x7), region = 86 }
 0x13a   :  { %607 = vsyncpa [#allocation4], 1 }
 0x13b   :  { %609 = vsyncpa [#allocation4 + $0x1], 1 }

</bundles_post_ra>
